<compile_context>
chip_gen: v6e
topology: v6e:2x2x1
jax: 0.10.0
libtpu: 0.0.40
codegen_flags: <defaults>
</compile_context>

<pallas_src>
import functools

import jax
import jax.numpy as jnp
from jax.experimental import pallas as pl
from jax.experimental.pallas import tpu as pltpu

IGNORE_INDEX = -100


def _ce2d_kernel(logits_ref, tgt_ref, sum_ref, cnt_ref, *,
                 ignore_index, n_classes, strip_rows, n_strips, acc_rows):
    j = pl.program_id(2)

    # per-(n, split) accumulator blocks are resident across the (arbitrary) j axis
    @pl.when(j == 0)
    def _():
        sum_ref[...] = jnp.zeros_like(sum_ref)
        cnt_ref[...] = jnp.zeros_like(cnt_ref)

    nll_acc = jnp.zeros((strip_rows, 128), jnp.float32)
    cnt_acc = jnp.zeros((strip_rows, 128), jnp.int32)

    # Fully-unrolled strip loop: static, sublane-aligned offsets; every
    # per-strip intermediate stays in vregs (no spills at tile_rows=512).
    for r in range(n_strips):
        off = r * strip_rows
        tg = tgt_ref[0, 0, pl.ds(off, strip_rows), :]          # (strip, 128) int32
        valid = tg != ignore_index                             # padding is ignore_index

        # pass 1: class max (cross-vreg elementwise, pure VPU)
        m = logits_ref[0, 0, pl.ds(off, strip_rows), :].astype(jnp.float32)
        for c in range(1, n_classes):
            xc = logits_ref[0, c, pl.ds(off, strip_rows), :].astype(jnp.float32)
            m = jnp.maximum(m, xc)

        # pass 2: fused exp-sum (EUP) + one-hot target select (no class iota)
        s = jnp.zeros_like(m)
        sel = jnp.zeros_like(m)
        for c in range(n_classes):
            xc = logits_ref[0, c, pl.ds(off, strip_rows), :].astype(jnp.float32)
            s = s + jnp.exp(xc - m)
            sel = jnp.where(tg == c, xc, sel)

        lse = jnp.log(s) + m                                   # log-sum-exp
        nll_acc = nll_acc + jnp.where(valid, lse - sel, 0.0)   # -log_softmax[target]
        cnt_acc = cnt_acc + valid.astype(jnp.int32)

    # reduce the strip accumulator to (acc_rows, 128) with cross-vreg adds so
    # the resident output block (and its RMW traffic) stays tiny
    if acc_rows != strip_rows:
        nll_acc = nll_acc.reshape(strip_rows // acc_rows, acc_rows, 128).sum(axis=0)
        cnt_acc = cnt_acc.reshape(strip_rows // acc_rows, acc_rows, 128).sum(axis=0)

    sum_ref[0, 0] += nll_acc
    cnt_ref[0, 0] += cnt_acc


def cross_entropy_2d(inp, target, *, ignore_index=IGNORE_INDEX,
                     max_tile_rows=512):
    """inp: (N, C, H, W) float; target: (N, H, W) or (N, 1, H, W) int.

    Returns scalar f32 loss matching
      nn.NLLLoss2d(None, size_average=True, ignore_index)(log_softmax(inp, 1), target)
    """
    if target.ndim == 4:
        n_, _, h_, w_ = target.shape
        target = target.reshape(n_, h_, w_)

    n, c, h, w = inp.shape
    hw = h * w
    hw_pad = ((hw + 127) // 128) * 128

    logits = inp.reshape(n, c, hw)
    tgt = target.reshape(n, hw).astype(jnp.int32)
    if hw_pad != hw:
        # small (<128 col) pad on the pixel axis only
        logits = jnp.pad(logits, ((0, 0), (0, 0), (0, hw_pad - hw)))
        tgt = jnp.pad(tgt, ((0, 0), (0, hw_pad - hw)),
                      constant_values=ignore_index)

    hw_rows = hw_pad // 128
    logits = logits.reshape(n, c, hw_rows, 128)      # free reshape (contiguous)
    tgt = tgt.reshape(n, hw_rows, 128)

    # --- tile sizing: biggest block whose double-buffered inputs fit the budget
    itemsize = jnp.dtype(inp.dtype).itemsize
    bytes_per_row = 128 * (c * itemsize + 4)         # logits + int32 target per pixel-row
    budget = 12 * 1024 * 1024                        # double-buffered input bytes
    cap = max(8, (budget // (2 * bytes_per_row)) // 8 * 8)
    cap = int(min(cap, max_tile_rows))

    hw_rows_8 = ((hw_rows + 7) // 8) * 8
    if hw_rows < 8:
        tile_rows = hw_rows                          # tiny image: block == full extent
    elif hw_rows_8 <= cap:
        tile_rows = hw_rows_8                        # single (possibly partial) block
    else:
        tile_rows = cap                              # multiple of 8
    grid_j = -(-hw_rows // tile_rows)

    # split the pixel-block axis across two TensorCores (helps v7x when N < 2)
    splits = 2 if grid_j >= 2 else 1
    j_per_split = -(-grid_j // splits)
    last_block = grid_j - 1

    # strip / accumulator sizing
    strip_rows = next((st for st in (32, 16, 8) if tile_rows % st == 0), tile_rows)
    n_strips = tile_rows // strip_rows
    acc_rows = 8 if strip_rows % 8 == 0 else strip_rows

    # Pad targets with ignore_index up to the full blocked extent so the kernel
    # needs NO per-pixel `pix < hw` mask: lane padding, the ragged tail block,
    # and over-split (clamped) blocks all read ignore_index and contribute 0.
    total_rows = splits * j_per_split * tile_rows
    if total_rows != hw_rows:
        tgt = jnp.pad(tgt, ((0, 0), (0, total_rows - hw_rows), (0, 0)),
                      constant_values=ignore_index)
    tgt = tgt.reshape(n, 1, total_rows, 128)

    def logits_map(i, s, j):
        jb = s * j_per_split + j
        jb = jnp.minimum(jb, last_block)             # clamp over-split blocks in-bounds
        return (i, 0, jb, 0)

    def tgt_map(i, s, j):
        return (i, 0, s * j_per_split + j, 0)        # tgt padded -> always in-bounds

    def out_map(i, s, j):
        return (i, s, 0, 0)                          # constant across j -> accumulator

    sum_out, cnt_out = pl.pallas_call(
        functools.partial(_ce2d_kernel, ignore_index=ignore_index, n_classes=c,
                          strip_rows=strip_rows, n_strips=n_strips,
                          acc_rows=acc_rows),
        out_shape=(jax.ShapeDtypeStruct((n, splits, acc_rows, 128), jnp.float32),
                   jax.ShapeDtypeStruct((n, splits, acc_rows, 128), jnp.int32)),
        grid_spec=pltpu.PrefetchScalarGridSpec(
            num_scalar_prefetch=0,
            grid=(n, splits, j_per_split),
            in_specs=[
                pl.BlockSpec((1, c, tile_rows, 128), logits_map),
                pl.BlockSpec((1, 1, tile_rows, 128), tgt_map),
            ],
            out_specs=[
                pl.BlockSpec((1, 1, acc_rows, 128), out_map),
                pl.BlockSpec((1, 1, acc_rows, 128), out_map),
            ],
        ),
        compiler_params=pltpu.CompilerParams(
            dimension_semantics=("parallel", "parallel", "arbitrary"),
            vmem_limit_bytes=32 * 1024 * 1024),
    )(logits, tgt)

    # final tiny reduction + divide in plain JAX (weight=None, size_average=True)
    total = jnp.sum(sum_out)
    count = jnp.sum(cnt_out).astype(jnp.float32)
    return total / count


def _reference(inp, target, ignore_index=IGNORE_INDEX):
    if target.ndim == 4:
        n_, _, h_, w_ = target.shape
        target = target.reshape(n_, h_, w_)
    logp = jax.nn.log_softmax(inp.astype(jnp.float32), axis=1)  # (N,C,H,W)
    n, c, h, w = inp.shape
    logp = jnp.transpose(logp, (0, 2, 3, 1)).reshape(-1, c)
    t = target.reshape(-1).astype(jnp.int32)
    valid = t != ignore_index
    t_safe = jnp.where(valid, t, 0)
    picked = jnp.take_along_axis(logp, t_safe[:, None], axis=1)[:, 0]
    nll = jnp.where(valid, -picked, 0.0)
    return jnp.sum(nll) / jnp.sum(valid.astype(jnp.float32))


if __name__ == "__main__":
    key = jax.random.PRNGKey(0)
    k1, k2, k3 = jax.random.split(key, 3)

    N, C, H, W = 2, 4, 16, 16
    x = jax.random.normal(k1, (N, C, H, W), dtype=jnp.float32)
    tgt = jax.random.randint(k2, (N, H, W), 0, C, dtype=jnp.int32)
    # sprinkle some ignore_index pixels to exercise the masking path
    ignore_mask = jax.random.bernoulli(k3, 0.1, (N, H, W))
    tgt = jnp.where(ignore_mask, IGNORE_INDEX, tgt)

    loss = cross_entropy_2d(x, tgt)
    loss = jax.block_until_ready(loss)

    ref = _reference(x, tgt)
    assert jnp.allclose(loss, ref, atol=1e-5, rtol=1e-5), (loss, ref)

    print("KERNEL_OK")
</pallas_src>

<mosaic_0001>
module attributes {stable_mosaic.version = 11 : i64} {
  func.func @_ce2d_kernel(%arg0: i32, %arg1: i32, %arg2: i32, %arg3: memref<1x4x2x128xf32, #tpu.memory_space<vmem>>, %arg4: memref<1x1x2x128xi32, #tpu.memory_space<vmem>>, %arg5: memref<1x1x2x128xf32, #tpu.memory_space<vmem>>, %arg6: memref<1x1x2x128xi32, #tpu.memory_space<vmem>>) attributes {dimension_semantics = [#tpu.dimension_semantics<parallel>, #tpu.dimension_semantics<parallel>, #tpu.dimension_semantics<arbitrary>], iteration_bounds = array<i64: 2, 1, 1>, scalar_prefetch = 0 : i64, scratch_operands = 0 : i64, tpu.core_type = #tpu.core_type<tc>, window_params = [{transform_indices = @transform_0, window_bounds = array<i64: 1, 4, 2, 128>}, {transform_indices = @transform_1, window_bounds = array<i64: 1, 1, 2, 128>}, {transform_indices = @transform_2, window_bounds = array<i64: 1, 1, 2, 128>}, {transform_indices = @transform_3, window_bounds = array<i64: 1, 1, 2, 128>}]} {
    %c0_i32 = arith.constant 0 : i32
    %0 = arith.cmpi eq, %arg2, %c0_i32 : i32
    %1 = arith.extui %0 : i1 to i32
    %c0_i32_0 = arith.constant 0 : i32
    %2 = arith.cmpi ne, %1, %c0_i32_0 : i32
    scf.if %2 {
      %cst_54 = arith.constant 0.000000e+00 : f32
      %74 = vector.broadcast %cst_54 : f32 to vector<1x1x2x128xf32>
      %c0_55 = arith.constant 0 : index
      %c0_56 = arith.constant 0 : index
      %c0_57 = arith.constant 0 : index
      %c0_58 = arith.constant 0 : index
      %75 = vector.load %arg5[%c0_55, %c0_56, %c0_57, %c0_58] : memref<1x1x2x128xf32, #tpu.memory_space<vmem>>, vector<1x1x2x128xf32>
      tpu.vector_store %arg5[%c0_55, %c0_56, %c0_57, %c0_58], %74 {strides = array<i32>} : memref<1x1x2x128xf32, #tpu.memory_space<vmem>>, vector<1x1x2x128xf32>,
      %c0_i32_59 = arith.constant 0 : i32
      %76 = vector.broadcast %c0_i32_59 : i32 to vector<1x1x2x128xi32>
      %c0_60 = arith.constant 0 : index
      %c0_61 = arith.constant 0 : index
      %c0_62 = arith.constant 0 : index
      %c0_63 = arith.constant 0 : index
      %77 = vector.load %arg6[%c0_60, %c0_61, %c0_62, %c0_63] : memref<1x1x2x128xi32, #tpu.memory_space<vmem>>, vector<1x1x2x128xi32>
      tpu.vector_store %arg6[%c0_60, %c0_61, %c0_62, %c0_63], %76 {strides = array<i32>} : memref<1x1x2x128xi32, #tpu.memory_space<vmem>>, vector<1x1x2x128xi32>,
    } else {
    }
    %cst = arith.constant 0.000000e+00 : f32
    %3 = vector.broadcast %cst : f32 to vector<2x128xf32>
    %c0_i32_1 = arith.constant 0 : i32
    %4 = vector.broadcast %c0_i32_1 : i32 to vector<2x128xi32>
    %c0 = arith.constant 0 : index
    %c0_2 = arith.constant 0 : index
    %c0_3 = arith.constant 0 : index
    %c0_4 = arith.constant 0 : index
    %5 = vector.load %arg4[%c0, %c0_2, %c0_3, %c0_4] : memref<1x1x2x128xi32, #tpu.memory_space<vmem>>, vector<1x1x2x128xi32>
    %6 = vector.shape_cast %5 : vector<1x1x2x128xi32> to vector<2x128xi32>
    %c-100_i32 = arith.constant -100 : i32
    %7 = vector.broadcast %c-100_i32 : i32 to vector<2x128xi32>
    %8 = arith.cmpi ne, %6, %7 : vector<2x128xi32>
    %c0_5 = arith.constant 0 : index
    %c0_6 = arith.constant 0 : index
    %c0_7 = arith.constant 0 : index
    %c0_8 = arith.constant 0 : index
    %9 = vector.load %arg3[%c0_5, %c0_6, %c0_7, %c0_8] : memref<1x4x2x128xf32, #tpu.memory_space<vmem>>, vector<1x1x2x128xf32>
    %10 = vector.shape_cast %9 : vector<1x1x2x128xf32> to vector<2x128xf32>
    %c0_9 = arith.constant 0 : index
    %c1 = arith.constant 1 : index
    %c0_10 = arith.constant 0 : index
    %c0_11 = arith.constant 0 : index
    %11 = vector.load %arg3[%c0_9, %c1, %c0_10, %c0_11] : memref<1x4x2x128xf32, #tpu.memory_space<vmem>>, vector<1x1x2x128xf32>
    %12 = vector.shape_cast %11 : vector<1x1x2x128xf32> to vector<2x128xf32>
    %13 = arith.maximumf %10, %12 : vector<2x128xf32>
    %c0_12 = arith.constant 0 : index
    %c2 = arith.constant 2 : index
    %c0_13 = arith.constant 0 : index
    %c0_14 = arith.constant 0 : index
    %14 = vector.load %arg3[%c0_12, %c2, %c0_13, %c0_14] : memref<1x4x2x128xf32, #tpu.memory_space<vmem>>, vector<1x1x2x128xf32>
    %15 = vector.shape_cast %14 : vector<1x1x2x128xf32> to vector<2x128xf32>
    %16 = arith.maximumf %13, %15 : vector<2x128xf32>
    %c0_15 = arith.constant 0 : index
    %c3 = arith.constant 3 : index
    %c0_16 = arith.constant 0 : index
    %c0_17 = arith.constant 0 : index
    %17 = vector.load %arg3[%c0_15, %c3, %c0_16, %c0_17] : memref<1x4x2x128xf32, #tpu.memory_space<vmem>>, vector<1x1x2x128xf32>
    %18 = vector.shape_cast %17 : vector<1x1x2x128xf32> to vector<2x128xf32>
    %19 = arith.maximumf %16, %18 : vector<2x128xf32>
    %cst_18 = arith.constant 0.000000e+00 : f32
    %20 = vector.broadcast %cst_18 : f32 to vector<2x128xf32>
    %cst_19 = arith.constant 0.000000e+00 : f32
    %21 = vector.broadcast %cst_19 : f32 to vector<2x128xf32>
    %c0_20 = arith.constant 0 : index
    %c0_21 = arith.constant 0 : index
    %c0_22 = arith.constant 0 : index
    %c0_23 = arith.constant 0 : index
    %22 = vector.load %arg3[%c0_20, %c0_21, %c0_22, %c0_23] : memref<1x4x2x128xf32, #tpu.memory_space<vmem>>, vector<1x1x2x128xf32>
    %23 = vector.shape_cast %22 : vector<1x1x2x128xf32> to vector<2x128xf32>
    %24 = arith.subf %23, %19 : vector<2x128xf32>
    %25 = math.exp %24 : vector<2x128xf32>
    %26 = arith.addf %20, %25 : vector<2x128xf32>
    %c0_i32_24 = arith.constant 0 : i32
    %27 = vector.broadcast %c0_i32_24 : i32 to vector<2x128xi32>
    %28 = arith.cmpi eq, %6, %27 : vector<2x128xi32>
    %29 = arith.select %28, %23, %21 : vector<2x128xi1>, vector<2x128xf32>
    %c0_25 = arith.constant 0 : index
    %c1_26 = arith.constant 1 : index
    %c0_27 = arith.constant 0 : index
    %c0_28 = arith.constant 0 : index
    %30 = vector.load %arg3[%c0_25, %c1_26, %c0_27, %c0_28] : memref<1x4x2x128xf32, #tpu.memory_space<vmem>>, vector<1x1x2x128xf32>
    %31 = vector.shape_cast %30 : vector<1x1x2x128xf32> to vector<2x128xf32>
    %32 = arith.subf %31, %19 : vector<2x128xf32>
    %33 = math.exp %32 : vector<2x128xf32>
    %34 = arith.addf %26, %33 : vector<2x128xf32>
    %c1_i32 = arith.constant 1 : i32
    %35 = vector.broadcast %c1_i32 : i32 to vector<2x128xi32>
    %36 = arith.cmpi eq, %6, %35 : vector<2x128xi32>
    %37 = arith.select %36, %31, %29 : vector<2x128xi1>, vector<2x128xf32>
    %c0_29 = arith.constant 0 : index
    %c2_30 = arith.constant 2 : index
    %c0_31 = arith.constant 0 : index
    %c0_32 = arith.constant 0 : index
    %38 = vector.load %arg3[%c0_29, %c2_30, %c0_31, %c0_32] : memref<1x4x2x128xf32, #tpu.memory_space<vmem>>, vector<1x1x2x128xf32>
    %39 = vector.shape_cast %38 : vector<1x1x2x128xf32> to vector<2x128xf32>
    %40 = arith.subf %39, %19 : vector<2x128xf32>
    %41 = math.exp %40 : vector<2x128xf32>
    %42 = arith.addf %34, %41 : vector<2x128xf32>
    %c2_i32 = arith.constant 2 : i32
    %43 = vector.broadcast %c2_i32 : i32 to vector<2x128xi32>
    %44 = arith.cmpi eq, %6, %43 : vector<2x128xi32>
    %45 = arith.select %44, %39, %37 : vector<2x128xi1>, vector<2x128xf32>
    %c0_33 = arith.constant 0 : index
    %c3_34 = arith.constant 3 : index
    %c0_35 = arith.constant 0 : index
    %c0_36 = arith.constant 0 : index
    %46 = vector.load %arg3[%c0_33, %c3_34, %c0_35, %c0_36] : memref<1x4x2x128xf32, #tpu.memory_space<vmem>>, vector<1x1x2x128xf32>
    %47 = vector.shape_cast %46 : vector<1x1x2x128xf32> to vector<2x128xf32>
    %48 = arith.subf %47, %19 : vector<2x128xf32>
    %49 = math.exp %48 : vector<2x128xf32>
    %50 = arith.addf %42, %49 : vector<2x128xf32>
    %c3_i32 = arith.constant 3 : i32
    %51 = vector.broadcast %c3_i32 : i32 to vector<2x128xi32>
    %52 = arith.cmpi eq, %6, %51 : vector<2x128xi32>
    %53 = arith.select %52, %47, %45 : vector<2x128xi1>, vector<2x128xf32>
    %54 = math.log %50 : vector<2x128xf32>
    %55 = arith.addf %54, %19 : vector<2x128xf32>
    %56 = arith.subf %55, %53 : vector<2x128xf32>
    %cst_37 = arith.constant 0.000000e+00 : f32
    %57 = vector.broadcast %cst_37 : f32 to vector<2x128xf32>
    %58 = arith.select %8, %56, %57 : vector<2x128xi1>, vector<2x128xf32>
    %59 = arith.addf %3, %58 : vector<2x128xf32>
    %60 = arith.extui %8 : vector<2x128xi1> to vector<2x128xi32>
    %61 = arith.addi %4, %60 : vector<2x128xi32>
    %c0_38 = arith.constant 0 : index
    %c0_39 = arith.constant 0 : index
    %c0_40 = arith.constant 0 : index
    %c0_41 = arith.constant 0 : index
    %62 = vector.load %arg5[%c0_38, %c0_39, %c0_40, %c0_41] : memref<1x1x2x128xf32, #tpu.memory_space<vmem>>, vector<1x1x2x128xf32>
    %63 = vector.shape_cast %62 : vector<1x1x2x128xf32> to vector<2x128xf32>
    %64 = arith.addf %63, %59 : vector<2x128xf32>
    %c0_42 = arith.constant 0 : index
    %c0_43 = arith.constant 0 : index
    %c0_44 = arith.constant 0 : index
    %c0_45 = arith.constant 0 : index
    %65 = vector.load %arg5[%c0_42, %c0_43, %c0_44, %c0_45] : memref<1x1x2x128xf32, #tpu.memory_space<vmem>>, vector<1x1x2x128xf32>
    %66 = vector.shape_cast %65 : vector<1x1x2x128xf32> to vector<2x128xf32>
    %67 = vector.shape_cast %64 : vector<2x128xf32> to vector<1x1x2x128xf32>
    tpu.vector_store %arg5[%c0_42, %c0_43, %c0_44, %c0_45], %67 {strides = array<i32>} : memref<1x1x2x128xf32, #tpu.memory_space<vmem>>, vector<1x1x2x128xf32>,
    %c0_46 = arith.constant 0 : index
    %c0_47 = arith.constant 0 : index
    %c0_48 = arith.constant 0 : index
    %c0_49 = arith.constant 0 : index
    %68 = vector.load %arg6[%c0_46, %c0_47, %c0_48, %c0_49] : memref<1x1x2x128xi32, #tpu.memory_space<vmem>>, vector<1x1x2x128xi32>
    %69 = vector.shape_cast %68 : vector<1x1x2x128xi32> to vector<2x128xi32>
    %70 = arith.addi %69, %61 : vector<2x128xi32>
    %c0_50 = arith.constant 0 : index
    %c0_51 = arith.constant 0 : index
    %c0_52 = arith.constant 0 : index
    %c0_53 = arith.constant 0 : index
    %71 = vector.load %arg6[%c0_50, %c0_51, %c0_52, %c0_53] : memref<1x1x2x128xi32, #tpu.memory_space<vmem>>, vector<1x1x2x128xi32>
    %72 = vector.shape_cast %71 : vector<1x1x2x128xi32> to vector<2x128xi32>
    %73 = vector.shape_cast %70 : vector<2x128xi32> to vector<1x1x2x128xi32>
    tpu.vector_store %arg6[%c0_50, %c0_51, %c0_52, %c0_53], %73 {strides = array<i32>} : memref<1x1x2x128xi32, #tpu.memory_space<vmem>>, vector<1x1x2x128xi32>,
    return
  }
  func.func @transform_0(%arg0: i32, %arg1: i32, %arg2: i32) -> (i32, i32, i32, i32) {
    %c1_i32 = arith.constant 1 : i32
    %0 = arith.muli %arg1, %c1_i32 : i32
    %1 = arith.addi %0, %arg2 : i32
    %c0_i32 = arith.constant 0 : i32
    %2 = arith.minsi %1, %c0_i32 : i32
    %c0_i32_0 = arith.constant 0 : i32
    %c0_i32_1 = arith.constant 0 : i32
    %c0_i32_2 = arith.constant 0 : i32
    return %arg0, %c0_i32_0, %2, %c0_i32_1 : i32, i32, i32, i32
  }
  func.func @transform_1(%arg0: i32, %arg1: i32, %arg2: i32) -> (i32, i32, i32, i32) {
    %c1_i32 = arith.constant 1 : i32
    %0 = arith.muli %arg1, %c1_i32 : i32
    %1 = arith.addi %0, %arg2 : i32
    %c0_i32 = arith.constant 0 : i32
    %c0_i32_0 = arith.constant 0 : i32
    %c0_i32_1 = arith.constant 0 : i32
    return %arg0, %c0_i32, %1, %c0_i32_0 : i32, i32, i32, i32
  }
  func.func @transform_2(%arg0: i32, %arg1: i32, %arg2: i32) -> (i32, i32, i32, i32) {
    %c0_i32 = arith.constant 0 : i32
    %c0_i32_0 = arith.constant 0 : i32
    %c0_i32_1 = arith.constant 0 : i32
    return %arg0, %arg1, %c0_i32, %c0_i32_0 : i32, i32, i32, i32
  }
  func.func @transform_3(%arg0: i32, %arg1: i32, %arg2: i32) -> (i32, i32, i32, i32) {
    %c0_i32 = arith.constant 0 : i32
    %c0_i32_0 = arith.constant 0 : i32
    %c0_i32_1 = arith.constant 0 : i32
    return %arg0, %arg1, %c0_i32, %c0_i32_0 : i32, i32, i32, i32
  }
}

</mosaic_0001>

<bundles_post_ra>
// kernel: tpu_custom_call.1
= control target key start
LH: loop header
LB: loop body
LE: loop exit
PB: predicated region body
PF: predicated region fallthrough
CT: control target
= control target key end

     0   :  { %s1049_s0 = inlined_call_operand.hbm [shape: f32[2,4,2,128], index: 0, kind: input, shape index: {}]   ;;  %s1050_s1 = inlined_call_operand.hbm [shape: s32[2,1,2,128], index: 1, kind: input, shape index: {}]   ;;  %s1051_s2 = inlined_call_operand.hbm [shape: f32[2,1,2,128], index: 2, kind: output, shape index: {0}]   ;;  %s1052_s3 = inlined_call_operand.hbm [shape: s32[2,1,2,128], index: 3, kind: output, shape index: {1}]  }
   0x1   :  { %1053 = sst [smem:[#allocation14_spill]] %s1049_s0 }
   0x2   :  { %9 = vsyncpa [#allocation3], 0 }
   0x3   :  { %11 = vsyncpa [#allocation3 + $0x1], 0 }
   0x4   :  { %12 = vsyncpa [#allocation6], 0 }
   0x5   :  { %14 = vsyncpa [#allocation6 + $0x1], 0 }
   0x6   :  { %15 = vsyncpa [#allocation4], 0 }
   0x7   :  { %17 = vsyncpa [#allocation4 + $0x1], 0 }
   0x8   :  { %18 = vsyncpa [#allocation9], 0 }
   0x9   :  { %20 = vsyncpa [#allocation9 + $0x1], 0  ;;  %s823_s12 = smov 0   ;;  %s825_s13 = smov 0  }
   0xa   :  { %s827_s14 = smov 0   ;;  %s829_s15 = smov 0  }
   0xb   :  { %s831_s16 = smov 0   ;;  %s833_s17 = smov 0  }
   0xc LB: > { %s513_s18 = sadd.s32 4294967295, %s793_s17   ;;  %s514_s19 = sadd.s32 4294967294, %s793_s17   ;;  %s793_s17 = sphi %s833_s17, %s26_s17   ;;  %s789_s16 = sphi %s831_s16, %s1066_s16   ;;  %s785_s15 = sphi %s829_s15, %s1065_s15   ;;  %s781_s14 = sphi %s827_s14, %s1064_s14   ;;  %s777_s13 = sphi %s825_s13, %s1063_s13   ;;  %s773_s12 = sphi %s823_s12, %s1062_s12  }
   0xd   : > { %s45_s20 = sadd.s32 1, %s789_s16  ;;  %s60_s21 = sadd.s32 1, %s781_s14 }
   0xe   : > { %p47_p0 = scmp.ge.s32.totalorder %s45_s20, 2  ;;  %p67_p1 = scmp.ne.s32.totalorder %s781_s14, %s777_s13 }
   0xf   : > { %p68_p2 = scmp.eq.s32.totalorder %s793_s17, 0  ;;  %p73_p3 = scmp.ne.s32.totalorder %s777_s13, %s773_s12 }
  0x10   : > { %s1068_s20 = smov (%p47_p0, %s45_s20), 0  ;;  %p74_p5 = scmp.eq.s32.totalorder %s513_s18, 0 }
  0x11   : > { %p864_p4 = por %p68_p2, %p67_p1  ;;  %s55_s23 = ssub.s32 %s789_s16, %s1068_s20 }
  0x12   : > { %p129_p6 = scmp.eq.s32.totalorder %s513_s18, 1  ;;  %p58_p7 = scmp.eq.s32.totalorder %s55_s23, 0 }
  0x13   : > { %p870_p8 = por %p74_p5, %p73_p3  ;;  %p135_p10 = scmp.eq.s32.totalorder %s514_s19, 1 }
  0x14   : > { %p874_p9 = por %p129_p6, %p67_p1  ;;  %p559_p13 = scmp.lt.s32.totalorder %s793_s17, 2 }
  0x15   : > { %s879_s26 = scalar_select %p58_p7, %s781_s14, %s60_s21  }
  0x16   : > { %p881_p11 = por %p135_p10, %p73_p3  ;;  %s888_s28 = sand.u32 1, %s781_s14  }
  0x17   : > { %s517_s29 = sshll.u32 %s888_s28, 3  ;;  %s536_s30 = sshll.u32 %s789_s16, 7 }
  0x18   : > { %s1058_s0 = sld [smem:[#allocation14_spill]]  ;;  %s187_s7 = scalar_lea.vmem [#allocation2], %s517_s29 }
  0x19   : > { %s198_s8 = sshll.u32 %s187_s7, 4  ;;  %p897_p0 = pnand %p559_p13, %p864_p4  ;;  %s199_s8 = int_to_ptr.vmem [resolvable:$true] %s198_s8 }
  0x1a   : > { %p522_p1 = scmp.ge.s32.totalorder %s793_s17, 1  ;;  %s184_s10 = scalar_lea.sflag [#allocation3], %s888_s28 }
  0x1b   : > { %p625_p2 = pneg %p897_p0  ;;  %s636_s11 = scalar_lea.vmem %s199_s8, 128 }
  0x1c   : > { %p637_p3 = scmp.ne.s32.totalorder %s199_s8, %s636_s11  ;;  %s795_s18 = smov [#allocation2]  }
  0x1d   : > { %s641_s19 = sshll.u32 %s795_s18, 4  ;;  %s642_s19 = int_to_ptr.vmem [resolvable:$false] %s641_s19 }
  0x1e   : > { %s197_s6 = scalar_lea.hbm %s1058_s0, %s536_s30  ;;  %p639_p5 = pnand %p637_p3, %p625_p2 }
  0x1f   : > { %s643_s21 = scalar_lea.vmem %s642_s19, 256  ;;  %p644_p4 = scmp.lt.s32.totalorder %s199_s8, %s642_s19 }
  0x20   : > { %p640_p6 = pneg %p639_p5  ;;  %p645_p7 = scmp.lt.s32.totalorder %s643_s21, %s636_s11 }
  0x22   : > { %p646_p10 = por %p645_p7, %p644_p4 }
  0x24   : > { %p647_p13 = pnand %p646_p10, %p640_p6 }
  0x26   : > { %650 = shalt.err (!%p647_p13)
}
  0x27   : > { %s796_s22 = smov 32   ;;  %s797_s23 = smov 2  }
  0x28   : > { %548 = dma.hbm_to_vmem [thread:$0]  (!%p897_p0), %s197_s6, 128, %s199_s8, %s184_s10, %s796_s22, %s796_s22, %s797_s23  }
  0x29   : > { %p226_p3 = scmp.lt.s32.totalorder %s793_s17, 3  ;;  %s520_s29 = sshll.u32 %s888_s28, 1 }
  0x2a   : > { %s521_s30 = sshll.u32 %s789_s16, 5  ;;  %s212_s18 = scalar_lea.vmem [#allocation5], %s520_s29 }
  0x2b   : > { %p915_p5 = pnand %p522_p1, %p226_p3  ;;  %s219_s11 = scalar_lea.hbm %s1050_s1, %s521_s30 }
  0x2c   : > { %s221_s19 = sshll.u32 %s212_s18, 4  ;;  %s209_s21 = scalar_lea.sflag [#allocation6], %s888_s28  ;;  %s222_s19 = int_to_ptr.vmem [resolvable:$true] %s221_s19 }
  0x2d   : > { %s664_s0 = scalar_lea.vmem %s222_s19, 32  ;;  %s798_s6 = smov [#allocation5]  }
  0x2e   : > { %p665_p6 = scmp.ne.s32.totalorder %s222_s19, %s664_s0  ;;  %s669_s8 = sshll.u32 %s798_s6, 4  ;;  %s670_s8 = int_to_ptr.vmem [resolvable:$false] %s669_s8 }
  0x2f   : > { %s671_s10 = scalar_lea.vmem %s670_s8, 64  ;;  %p672_p1 = scmp.lt.s32.totalorder %s222_s19, %s670_s8 }
  0x30   : > { %p667_p4 = pnand %p665_p6, %p625_p2  ;;  %p673_p10 = scmp.lt.s32.totalorder %s671_s10, %s664_s0 }
  0x32   : > { %p668_p7 = pneg %p667_p4  ;;  %p674_p13 = por %p673_p10, %p672_p1 }
  0x34   : > { %p675_p3 = pnand %p674_p13, %p668_p7 }
  0x36   : > { %678 = shalt.err (!%p675_p3)
}
  0x37   : > { %551 = dma.hbm_to_vmem [thread:$0]  (!%p897_p0), %s219_s11, 32, %s222_s19, %s209_s21  }
  0x38   : > { %230 = sbr.rel (%p915_p5) target bundleno = 149 (0x95), region = 28  ;;  %s931_s28 = sand.u32 (!%p915_p5), 1, %s777_s13  }
  0x39   : > { %s523_s22 = sshll.u32 (!%p915_p5), %s931_s28, 3  ;;  %s233_s23 = scalar_lea.sflag (!%p915_p5), [#allocation3], %s931_s28 }
  0x3a   : > { %s236_s29 = scalar_lea.vmem (!%p915_p5), [#allocation2], %s523_s22 }
  0x3d   : > { %756 = dma.done.wait (%p870_p8), %s233_s23, 128  }
  0x3e   : > { %758 = vsyncadd (%p870_p8), %s233_s23, 4294967168  ;;  %s524_s0 = sshll.u32 %s931_s28, 1  ;;  %s242_s9 = scalar_lea.sflag [#allocation6], %s931_s28 }
  0x3f   : > { %s245_s30 = scalar_lea.vmem [#allocation5], %s524_s0 }
  0x40   : > { %760 = dma.done.wait (%p870_p8), %s242_s9, 32  }
  0x41   : > { %762 = vsyncadd (%p870_p8), %s242_s9, 4294967264  ;;  %s945_s4 = scalar_lea.vmem [#allocation7], %s524_s0  ;;  %v799_v0 = vmov 0.0   ;;  %s277_s5 = scalar_lea.vmem [#allocation8], %s524_s0  ;;  %v800_v1 = vmov 0  }
  0x42   : > { %286 = vst [vmem:[%s945_s4] sm:$0x3] %v799_v0  ;;  %287 = vst [vmem:[%s277_s5] sm:$0x3] %v800_v1  ;;  %v948_v2 = vld [vmem:[%s245_s30] sm:$0x3]  ;;  %v290_v3 = vld [vmem:[%s236_s29] sm:$0x3] }
  0x43   : > { %v950_v4 = vld [vmem:[%s236_s29 + $0x2] sm:$0x3]  ;;  %vm289_vm0 = vcmp.ne.s32.totalorder %v948_v2, 4294967196  ;;  %v954_v6 = vld [vmem:[%s236_s29 + $0x4] sm:$0x3]  ;;  %s532_s24 = sshll.u32 %s785_s15, 5 }
  0x44   : > { %v293_v5 = vmax.f32 %v290_v3, %v950_v4  ;;  %s371_s7 = sshll.u32 %s277_s5, 4  ;;  %v957_v7 = vld [vmem:[%s236_s29 + $0x6] sm:$0x3]  ;;  %v330_v9 = vsel %vm289_vm0, 1, %v800_v1  ;;  %s967_s19 = scalar_lea.hbm %s1052_s3, %s532_s24  ;;  %s969_s7 = int_to_ptr.vmem [resolvable:$true] %s371_s7 }
  0x45   : > { %s343_s21 = scalar_lea.sflag [#allocation9], %s931_s28  ;;  %s679_s6 = scalar_lea.vmem %s969_s7, 32 }
  0x46   : > { %v296_v8 = vmax.f32 %v293_v5, %v954_v6  ;;  %p680_p8 = scmp.ne.s32.totalorder %s969_s7, %s679_s6  ;;  %s801_s8 = smov [#allocation8]  }
  0x47   : > { %s683_s10 = sshll.u32 %s801_s8, 4  ;;  %s684_s10 = int_to_ptr.vmem [resolvable:$false] %s683_s10 }
  0x48   : > { %v299_v12 = vmax.f32 %v296_v8, %v957_v7  ;;  %p681_p0 = pnand %p680_p8, %p874_p9  ;;  %s685_s22 = scalar_lea.vmem %s684_s10, 64 }
  0x49   : > { %v334_v10 = vld [vmem:[%s277_s5] sm:$0x3]  ;;  %p686_p5 = scmp.lt.s32.totalorder %s969_s7, %s684_s10  ;;  %p687_p6 = scmp.lt.s32.totalorder %s685_s22, %s679_s6 }
  0x4a   : > { %v335_v11 = vadd.s32 %v334_v10, %v330_v9  ;;  %v300_v13 = vsub.f32 %v290_v3, %v299_v12  ;;  %v306_v14 = vsub.f32 %v950_v4, %v299_v12  ;;  %v312_v15 = vsub.f32 %v954_v6, %v299_v12  ;;  %p682_p2 = pneg %p681_p0 }
  0x4b   : > { %v318_v16 = vsub.f32 %v957_v7, %v299_v12  ;;  %p688_p4 = por %p687_p6, %p686_p5 }
  0x4c   : > { %336 = vst [vmem:[%s277_s5] sm:$0x3] %v335_v11 }
  0x4d   : > { %p689_p7 = pnand %p688_p4, %p682_p2 }
  0x4f   : > { %692 = shalt.err (!%p689_p7)
}
  0x50   : > { %s693_s23 = scalar_lea.hbm %s967_s19, 32  ;;  %s697_s9 = scalar_lea.hbm %s1052_s3, 64 }
  0x51   : > { %p694_p1 = scmp.ne.s32.totalorder %s967_s19, %s693_s23  ;;  %p698_p3 = scmp.lt.s32.totalorder %s967_s19, %s1052_s3 }
  0x52   : > { %p699_p8 = scmp.lt.s32.totalorder %s697_s9, %s693_s23 }
  0x53   : > { %p695_p10 = pnand %p694_p1, %p874_p9 }
  0x54   : > { %p700_p0 = por %p699_p8, %p698_p3 }
  0x55   : > { %p696_p13 = pneg %p695_p10 }
  0x57   : > { %p701_p2 = pnand %p700_p0, %p696_p13 }
  0x59   : > { %704 = shalt.err (!%p701_p2)
}
  0x5a   : > { %542 = dma.vmem_to_hbm [thread:$0]  (%p874_p9), %s969_s7, 32, %s967_s19, %s343_s21   ;;  %v301_v17 = vmul.f32 1.442695, %v300_v13  ;;  %v307_v18 = vmul.f32 1.442695, %v306_v14  ;;  %vm304_vm1 = vcmp.eq.s32.totalorder %v948_v2, 0 }
  0x5b   : > { %v313_v19 = vmul.f32 1.442695, %v312_v15  ;;  %v319_v20 = vmul.f32 1.442695, %v318_v16  ;;  %v305_v28 = vsel %vm304_vm1, %v290_v3, 0.0  ;;  %vm310_vm2 = vcmp.eq.s32.totalorder %v948_v2, 1  ;;  %s355_s19 = scalar_lea.hbm %s1051_s2, %s532_s24 }
  0x5c   : > { %613 = vpow2.f32 %v301_v17  ;;  %v311_v29 = vsel %vm310_vm2, %v950_v4, %v305_v28  ;;  %vm316_vm3 = vcmp.eq.s32.totalorder %v948_v2, 2  ;;  %vm322_vm4 = vcmp.eq.s32.totalorder %v948_v2, 3  ;;  %v331_v36 = vld [vmem:[%s945_s4] sm:$0x3]  ;;  %s357_s7 = sshll.u32 %s945_s4, 4  ;;  %s338_s21 = scalar_lea.sflag [#allocation4], %s931_s28  ;;  %s358_s7 = int_to_ptr.vmem [resolvable:$true] %s357_s7 }
  0x5d   : > { %615 = vpow2.f32 %v307_v18  ;;  %v317_v30 = vsel %vm316_vm3, %v954_v6, %v311_v29  ;;  %s705_s6 = scalar_lea.vmem %s358_s7, 32  ;;  %s802_s8 = smov [#allocation7]  }
  0x5e   : > { %617 = vpow2.f32 %v313_v19  ;;  %v323_v33 = vsel %vm322_vm4, %v957_v7, %v317_v30  ;;  %p706_p5 = scmp.ne.s32.totalorder %s358_s7, %s705_s6  ;;  %s709_s10 = sshll.u32 %s802_s8, 4  ;;  %s710_s10 = int_to_ptr.vmem [resolvable:$false] %s709_s10 }
  0x5f   : > { %619 = vpow2.f32 %v319_v20  ;;  %s711_s22 = scalar_lea.vmem %s710_s10, 64  ;;  %p712_p7 = scmp.lt.s32.totalorder %s358_s7, %s710_s10 }
  0x60   : > { %p707_p6 = pnand %p706_p5, %p874_p9  ;;  %p713_p1 = scmp.lt.s32.totalorder %s711_s22, %s705_s6 }
  0x62   : > { %p708_p4 = pneg %p707_p6  ;;  %p714_p10 = por %p713_p1, %p712_p7 }
  0x64   : > { %p715_p13 = pnand %p714_p10, %p708_p4 }
  0x69   : > { %v614_v21 = vpop.eup %613 }
  0x6a   : > { %v616_v22 = vpop.eup %615 }
  0x6b   : > { %v618_v23 = vpop.eup %617  ;;  %v309_v24 = vadd.f32 %v616_v22, %v614_v21 }
  0x6c   : > { %v620_v25 = vpop.eup %619 }
  0x6d   : > { %v315_v26 = vadd.f32 %v618_v23, %v309_v24 }
  0x6f   : > { %v321_v27 = vadd.f32 %v620_v25, %v315_v26 }
  0x71   : > { %621 = vlog2.f32 %v321_v27 }
  0x7e   : > { %v622_v31 = vpop.eup %621 }
  0x7f   : > { %v325_v32 = vmul.f32 0.6931472, %v622_v31 }
  0x81   : > { %v326_v34 = vadd.f32 %v325_v32, %v299_v12 }
  0x83   : > { %v327_v35 = vsub.f32 %v326_v34, %v323_v33 }
  0x85   : > { %v328_v37 = vsel %vm289_vm0, %v327_v35, 0.0 }
  0x86   : > { %v332_v38 = vadd.f32 %v331_v36, %v328_v37 }
  0x88   : > { %333 = vst [vmem:[%s945_s4] sm:$0x3] %v332_v38 }
  0x89   : > { %718 = shalt.err (!%p715_p13)
}
  0x8a   : > { %s719_s15 = scalar_lea.hbm %s355_s19, 32  ;;  %s723_s24 = scalar_lea.hbm %s1051_s2, 64 }
  0x8b   : > { %p720_p3 = scmp.ne.s32.totalorder %s355_s19, %s719_s15  ;;  %p724_p2 = scmp.lt.s32.totalorder %s355_s19, %s1051_s2 }
  0x8c   : > { %p725_p5 = scmp.lt.s32.totalorder %s723_s24, %s719_s15 }
  0x8d   : > { %p721_p8 = pnand %p720_p3, %p874_p9 }
  0x8e   : > { %p726_p6 = por %p725_p5, %p724_p2 }
  0x8f   : > { %p722_p0 = pneg %p721_p8 }
  0x91   : > { %p727_p12 = pnand %p726_p6, %p722_p0 }
  0x93   : > { %730 = shalt.err (!%p727_p12)
}
  0x94   : > { %541 = dma.vmem_to_hbm [thread:$0]  (%p874_p9), %s358_s7, 32, %s355_s19, %s338_s21  }
  0x95 PF: > { %s383_s0 = sand.u32 1, %s773_s12   ;;  %p1061_p4 = scmp.ge.s32.totalorder %s793_s17, 2 }
  0x96   : > { %s384_s9 = scalar_lea.sflag [#allocation4], %s383_s0 }
  0x97   : > { %p553_p7 = pnand %p1061_p4, %p881_p11 }
  0x99   : > { %p554_p1 = pneg %p553_p7 }
  0x9b   : > { %764 = dma.done.wait (%p554_p1), %s384_s9, 32  }
  0x9c   : > { %766 = vsyncadd (%p554_p1), %s384_s9, 4294967264  ;;  %s393_s30 = scalar_lea.sflag [#allocation9], %s383_s0 }
  0x9d   : > { %768 = dma.done.wait (%p554_p1), %s393_s30, 32  }
  0x9e   : > { %770 = vsyncadd (%p554_p1), %s393_s30, 4294967264  ;;  %s26_s17 = sadd.s32 1, %s793_s17   ;;  %s1062_s12 = smov %s777_s13 }
  0x9f   : > { %p23_p12 = scmp.ge.s32.totalorder %s26_s17, 4   ;;  %s1063_s13 = smov %s781_s14 }
  0xa0   : > { %s1064_s14 = smov %s879_s26  ;;  %s1065_s15 = smov %s789_s16 }
  0xa1   : > { %s1066_s16 = smov %s1068_s20  ;;  %25 = sbr.rel (!%p23_p12) target bundleno = 12 (0xc), region = 110 }
  0xa6   :  { %398 = vsyncpa [#allocation3], 1 }
  0xa7   :  { %400 = vsyncpa [#allocation3 + $0x1], 1 }
  0xa8   :  { %401 = vsyncpa [#allocation6], 1 }
  0xa9   :  { %403 = vsyncpa [#allocation6 + $0x1], 1 }
  0xaa   :  { %404 = vsyncpa [#allocation4], 1 }
  0xab   :  { %406 = vsyncpa [#allocation4 + $0x1], 1 }
  0xac   :  { %407 = vsyncpa [#allocation9], 1 }
  0xad   :  { %409 = vsyncpa [#allocation9 + $0x1], 1 }

</bundles_post_ra>
